<compile_context>
chip_gen: v6e
topology: v6e:2x2x1
jax: 0.10.0
libtpu: 0.0.40
codegen_flags: <defaults>
</compile_context>

<pallas_src>
import jax
import jax.numpy as jnp
from jax.experimental import pallas as pl
from jax.experimental.pallas import tpu as pltpu

HIDDEN = 16   # hidden width of the first Linear
IN_DIM = 2    # input features
LANES = 128   # vreg lane width


def _pre_net_kernel(w1_ref, b1_ref, w2_ref, b2_ref, x_ref, out_ref):
    """x_ref: (2, TILE_R, 128) VMEM; out_ref: (TILE_R, 128) VMEM; params in SMEM.

    w1_ref: (32,)  flat row-major (in, out) -> w1_ref[i*16 + j] = W1[i, j]
    b1_ref: (16,), w2_ref: (16,), b2_ref: (1,)
    """
    x0 = x_ref[0]                           # (TILE_R, 128) feature 0, full vregs
    x1 = x_ref[1]                           # (TILE_R, 128) feature 1

    # Accumulate output in f32, seeded with the second-layer bias.
    acc = jnp.zeros_like(x0) + b2_ref[0]

    # Fully unrolled VPU MACs (16 hidden units); scalars splat from SMEM.
    for j in range(HIDDEN):
        h = x0 * w1_ref[j] + x1 * w1_ref[HIDDEN + j] + b1_ref[j]
        h = jnp.maximum(h, 0.0)             # ReLU
        acc = acc + h * w2_ref[j]

    out_ref[...] = acc


def _cdiv(n, m):
    return (n + m - 1) // m


def _round_up(n, m):
    return ((n + m - 1) // m) * m


def pre_net_forward(x, w1, b1, w2, b2, *, tile_rows=2048):
    """x: (B, 2) float32 -> (B, 1) float32.

    w1: (2, 16), b1: (16,), w2: (16, 1), b2: (1,)  (stored as (in, out)).
    """
    B = x.shape[0]
    x = x.astype(jnp.float32)

    # Lay the batch out as (rows, 128): rows on sublanes, 128 on lanes.
    n_rows = max(_cdiv(B, LANES), 1)
    tile_rows = min(tile_rows, _round_up(n_rows, 8))   # both multiples of 8
    n_rows_pad = _round_up(n_rows, tile_rows)
    b_pad = n_rows_pad * LANES

    xt = jnp.transpose(x)                              # (2, B) — batch contiguous
    if b_pad != B:
        xt = jnp.pad(xt, ((0, 0), (0, b_pad - B)))     # zero-pad tail
    xt = xt.reshape(IN_DIM, n_rows_pad, LANES)         # free reshape (contiguous)

    w1_flat = w1.reshape(-1).astype(jnp.float32)       # (32,)
    b1_flat = b1.reshape(-1).astype(jnp.float32)       # (16,)
    w2_flat = w2.reshape(-1).astype(jnp.float32)       # (16,)
    b2_flat = b2.reshape(-1).astype(jnp.float32)       # (1,)

    grid = (n_rows_pad // tile_rows,)

    cost = pl.CostEstimate(
        flops=2 * B * (IN_DIM * HIDDEN + HIDDEN),      # both layers' MACs*2
        transcendentals=0,
        bytes_accessed=4 * (IN_DIM * b_pad + b_pad
                            + w1_flat.size + b1_flat.size
                            + w2_flat.size + b2_flat.size),
    )

    smem_spec = pl.BlockSpec(memory_space=pltpu.MemorySpace.SMEM)

    out2d = pl.pallas_call(
        _pre_net_kernel,
        out_shape=jax.ShapeDtypeStruct((n_rows_pad, LANES), jnp.float32),
        grid=grid,
        in_specs=[
            smem_spec,                                            # w1 (resident scalars)
            smem_spec,                                            # b1
            smem_spec,                                            # w2
            smem_spec,                                            # b2
            pl.BlockSpec((IN_DIM, tile_rows, LANES), lambda i: (0, i, 0)),  # x tile
        ],
        out_specs=pl.BlockSpec((tile_rows, LANES), lambda i: (i, 0)),       # dense out
        compiler_params=pltpu.CompilerParams(
            dimension_semantics=("parallel",),          # split batch over TCs (v7x)
        ),
        cost_estimate=cost,
    )(w1_flat, b1_flat, w2_flat, b2_flat, xt)

    return out2d.reshape(-1)[:B].reshape(B, 1)          # back to (B, 1)


def init_params(key):
    """Deterministic init mimicking nn.Linear's U(-1/sqrt(fan_in), 1/sqrt(fan_in))."""
    k1, k2, k3, k4 = jax.random.split(key, 4)
    bound1 = 1.0 / jnp.sqrt(2.0)    # fan_in = 2
    bound2 = 1.0 / jnp.sqrt(16.0)   # fan_in = 16
    # Stored as (in_features, out_features) so y = x @ W + b (== PyTorch x @ W.T + b).
    w1 = jax.random.uniform(k1, (IN_DIM, HIDDEN), jnp.float32, -bound1, bound1)
    b1 = jax.random.uniform(k2, (HIDDEN,), jnp.float32, -bound1, bound1)
    w2 = jax.random.uniform(k3, (HIDDEN, 1), jnp.float32, -bound2, bound2)
    b2 = jax.random.uniform(k4, (1,), jnp.float32, -bound2, bound2)
    return w1, b1, w2, b2


def _reference(x, w1, b1, w2, b2):
    return jnp.maximum(x @ w1 + b1, 0.0) @ w2 + b2


if __name__ == "__main__":
    key = jax.random.PRNGKey(0)
    k_params, k_x1, k_x2, k_x3 = jax.random.split(key, 4)

    w1, b1, w2, b2 = init_params(k_params)

    # Small shipped shape (batch=8, in_features=2).
    x = jax.random.normal(k_x1, (8, IN_DIM), jnp.float32)
    out = jax.block_until_ready(pre_net_forward(x, w1, b1, w2, b2))
    ref = _reference(x, w1, b1, w2, b2)
    assert out.shape == (8, 1)
    assert jnp.allclose(out, ref, atol=1e-5, rtol=1e-5)

    # Non-multiple-of-128 batch exercises the pad path.
    x2 = jax.random.normal(k_x2, (300, IN_DIM), jnp.float32)
    out2 = jax.block_until_ready(pre_net_forward(x2, w1, b1, w2, b2))
    ref2 = _reference(x2, w1, b1, w2, b2)
    assert out2.shape == (300, 1)
    assert jnp.allclose(out2, ref2, atol=1e-5, rtol=1e-5)

    # Larger batch with a small tile exercises the multi-step grid path.
    x3 = jax.random.normal(k_x3, (3000, IN_DIM), jnp.float32)
    out3 = jax.block_until_ready(pre_net_forward(x3, w1, b1, w2, b2, tile_rows=8))
    ref3 = _reference(x3, w1, b1, w2, b2)
    assert out3.shape == (3000, 1)
    assert jnp.allclose(out3, ref3, atol=1e-5, rtol=1e-5)

    print("KERNEL_OK")
</pallas_src>

<mosaic_0001>
module attributes {stable_mosaic.version = 11 : i64} {
  func.func @_pre_net_kernel(%arg0: i32, %arg1: memref<32xf32, #tpu.memory_space<smem>>, %arg2: memref<16xf32, #tpu.memory_space<smem>>, %arg3: memref<16xf32, #tpu.memory_space<smem>>, %arg4: memref<1xf32, #tpu.memory_space<smem>>, %arg5: memref<2x8x128xf32, #tpu.memory_space<vmem>>, %arg6: memref<8x128xf32, #tpu.memory_space<vmem>>) attributes {dimension_semantics = [#tpu.dimension_semantics<parallel>], iteration_bounds = array<i64: 1>, scalar_prefetch = 0 : i64, scratch_operands = 0 : i64, tpu.core_type = #tpu.core_type<tc>, window_params = [{transform_indices = @transform_0, window_bounds = array<i64: 32>}, {transform_indices = @transform_1, window_bounds = array<i64: 16>}, {transform_indices = @transform_2, window_bounds = array<i64: 16>}, {transform_indices = @transform_3, window_bounds = array<i64: 1>}, {transform_indices = @transform_4, window_bounds = array<i64: 2, 8, 128>}, {transform_indices = @transform_5, window_bounds = array<i64: 8, 128>}]} {
    %c0 = arith.constant 0 : index
    %c0_0 = arith.constant 0 : index
    %c0_1 = arith.constant 0 : index
    %0 = vector.load %arg5[%c0, %c0_0, %c0_1] : memref<2x8x128xf32, #tpu.memory_space<vmem>>, vector<1x8x128xf32>
    %1 = vector.shape_cast %0 : vector<1x8x128xf32> to vector<8x128xf32>
    %c1 = arith.constant 1 : index
    %c0_2 = arith.constant 0 : index
    %c0_3 = arith.constant 0 : index
    %2 = vector.load %arg5[%c1, %c0_2, %c0_3] : memref<2x8x128xf32, #tpu.memory_space<vmem>>, vector<1x8x128xf32>
    %3 = vector.shape_cast %2 : vector<1x8x128xf32> to vector<8x128xf32>
    %cst = arith.constant 0.000000e+00 : f32
    %4 = vector.broadcast %cst : f32 to vector<8x128xf32>
    %c0_4 = arith.constant 0 : index
    %5 = memref.load %arg4[%c0_4] : memref<1xf32, #tpu.memory_space<smem>>
    %6 = vector.broadcast %5 : f32 to vector<8x128xf32>
    %7 = arith.addf %4, %6 : vector<8x128xf32>
    %c0_5 = arith.constant 0 : index
    %8 = memref.load %arg1[%c0_5] : memref<32xf32, #tpu.memory_space<smem>>
    %9 = vector.broadcast %8 : f32 to vector<8x128xf32>
    %10 = arith.mulf %1, %9 : vector<8x128xf32>
    %c16 = arith.constant 16 : index
    %11 = memref.load %arg1[%c16] : memref<32xf32, #tpu.memory_space<smem>>
    %12 = vector.broadcast %11 : f32 to vector<8x128xf32>
    %13 = arith.mulf %3, %12 : vector<8x128xf32>
    %14 = arith.addf %10, %13 : vector<8x128xf32>
    %c0_6 = arith.constant 0 : index
    %15 = memref.load %arg2[%c0_6] : memref<16xf32, #tpu.memory_space<smem>>
    %16 = vector.broadcast %15 : f32 to vector<8x128xf32>
    %17 = arith.addf %14, %16 : vector<8x128xf32>
    %cst_7 = arith.constant 0.000000e+00 : f32
    %18 = vector.broadcast %cst_7 : f32 to vector<8x128xf32>
    %19 = arith.maximumf %17, %18 : vector<8x128xf32>
    %c0_8 = arith.constant 0 : index
    %20 = memref.load %arg3[%c0_8] : memref<16xf32, #tpu.memory_space<smem>>
    %21 = vector.broadcast %20 : f32 to vector<8x128xf32>
    %22 = arith.mulf %19, %21 : vector<8x128xf32>
    %23 = arith.addf %7, %22 : vector<8x128xf32>
    %c1_9 = arith.constant 1 : index
    %24 = memref.load %arg1[%c1_9] : memref<32xf32, #tpu.memory_space<smem>>
    %25 = vector.broadcast %24 : f32 to vector<8x128xf32>
    %26 = arith.mulf %1, %25 : vector<8x128xf32>
    %c17 = arith.constant 17 : index
    %27 = memref.load %arg1[%c17] : memref<32xf32, #tpu.memory_space<smem>>
    %28 = vector.broadcast %27 : f32 to vector<8x128xf32>
    %29 = arith.mulf %3, %28 : vector<8x128xf32>
    %30 = arith.addf %26, %29 : vector<8x128xf32>
    %c1_10 = arith.constant 1 : index
    %31 = memref.load %arg2[%c1_10] : memref<16xf32, #tpu.memory_space<smem>>
    %32 = vector.broadcast %31 : f32 to vector<8x128xf32>
    %33 = arith.addf %30, %32 : vector<8x128xf32>
    %cst_11 = arith.constant 0.000000e+00 : f32
    %34 = vector.broadcast %cst_11 : f32 to vector<8x128xf32>
    %35 = arith.maximumf %33, %34 : vector<8x128xf32>
    %c1_12 = arith.constant 1 : index
    %36 = memref.load %arg3[%c1_12] : memref<16xf32, #tpu.memory_space<smem>>
    %37 = vector.broadcast %36 : f32 to vector<8x128xf32>
    %38 = arith.mulf %35, %37 : vector<8x128xf32>
    %39 = arith.addf %23, %38 : vector<8x128xf32>
    %c2 = arith.constant 2 : index
    %40 = memref.load %arg1[%c2] : memref<32xf32, #tpu.memory_space<smem>>
    %41 = vector.broadcast %40 : f32 to vector<8x128xf32>
    %42 = arith.mulf %1, %41 : vector<8x128xf32>
    %c18 = arith.constant 18 : index
    %43 = memref.load %arg1[%c18] : memref<32xf32, #tpu.memory_space<smem>>
    %44 = vector.broadcast %43 : f32 to vector<8x128xf32>
    %45 = arith.mulf %3, %44 : vector<8x128xf32>
    %46 = arith.addf %42, %45 : vector<8x128xf32>
    %c2_13 = arith.constant 2 : index
    %47 = memref.load %arg2[%c2_13] : memref<16xf32, #tpu.memory_space<smem>>
    %48 = vector.broadcast %47 : f32 to vector<8x128xf32>
    %49 = arith.addf %46, %48 : vector<8x128xf32>
    %cst_14 = arith.constant 0.000000e+00 : f32
    %50 = vector.broadcast %cst_14 : f32 to vector<8x128xf32>
    %51 = arith.maximumf %49, %50 : vector<8x128xf32>
    %c2_15 = arith.constant 2 : index
    %52 = memref.load %arg3[%c2_15] : memref<16xf32, #tpu.memory_space<smem>>
    %53 = vector.broadcast %52 : f32 to vector<8x128xf32>
    %54 = arith.mulf %51, %53 : vector<8x128xf32>
    %55 = arith.addf %39, %54 : vector<8x128xf32>
    %c3 = arith.constant 3 : index
    %56 = memref.load %arg1[%c3] : memref<32xf32, #tpu.memory_space<smem>>
    %57 = vector.broadcast %56 : f32 to vector<8x128xf32>
    %58 = arith.mulf %1, %57 : vector<8x128xf32>
    %c19 = arith.constant 19 : index
    %59 = memref.load %arg1[%c19] : memref<32xf32, #tpu.memory_space<smem>>
    %60 = vector.broadcast %59 : f32 to vector<8x128xf32>
    %61 = arith.mulf %3, %60 : vector<8x128xf32>
    %62 = arith.addf %58, %61 : vector<8x128xf32>
    %c3_16 = arith.constant 3 : index
    %63 = memref.load %arg2[%c3_16] : memref<16xf32, #tpu.memory_space<smem>>
    %64 = vector.broadcast %63 : f32 to vector<8x128xf32>
    %65 = arith.addf %62, %64 : vector<8x128xf32>
    %cst_17 = arith.constant 0.000000e+00 : f32
    %66 = vector.broadcast %cst_17 : f32 to vector<8x128xf32>
    %67 = arith.maximumf %65, %66 : vector<8x128xf32>
    %c3_18 = arith.constant 3 : index
    %68 = memref.load %arg3[%c3_18] : memref<16xf32, #tpu.memory_space<smem>>
    %69 = vector.broadcast %68 : f32 to vector<8x128xf32>
    %70 = arith.mulf %67, %69 : vector<8x128xf32>
    %71 = arith.addf %55, %70 : vector<8x128xf32>
    %c4 = arith.constant 4 : index
    %72 = memref.load %arg1[%c4] : memref<32xf32, #tpu.memory_space<smem>>
    %73 = vector.broadcast %72 : f32 to vector<8x128xf32>
    %74 = arith.mulf %1, %73 : vector<8x128xf32>
    %c20 = arith.constant 20 : index
    %75 = memref.load %arg1[%c20] : memref<32xf32, #tpu.memory_space<smem>>
    %76 = vector.broadcast %75 : f32 to vector<8x128xf32>
    %77 = arith.mulf %3, %76 : vector<8x128xf32>
    %78 = arith.addf %74, %77 : vector<8x128xf32>
    %c4_19 = arith.constant 4 : index
    %79 = memref.load %arg2[%c4_19] : memref<16xf32, #tpu.memory_space<smem>>
    %80 = vector.broadcast %79 : f32 to vector<8x128xf32>
    %81 = arith.addf %78, %80 : vector<8x128xf32>
    %cst_20 = arith.constant 0.000000e+00 : f32
    %82 = vector.broadcast %cst_20 : f32 to vector<8x128xf32>
    %83 = arith.maximumf %81, %82 : vector<8x128xf32>
    %c4_21 = arith.constant 4 : index
    %84 = memref.load %arg3[%c4_21] : memref<16xf32, #tpu.memory_space<smem>>
    %85 = vector.broadcast %84 : f32 to vector<8x128xf32>
    %86 = arith.mulf %83, %85 : vector<8x128xf32>
    %87 = arith.addf %71, %86 : vector<8x128xf32>
    %c5 = arith.constant 5 : index
    %88 = memref.load %arg1[%c5] : memref<32xf32, #tpu.memory_space<smem>>
    %89 = vector.broadcast %88 : f32 to vector<8x128xf32>
    %90 = arith.mulf %1, %89 : vector<8x128xf32>
    %c21 = arith.constant 21 : index
    %91 = memref.load %arg1[%c21] : memref<32xf32, #tpu.memory_space<smem>>
    %92 = vector.broadcast %91 : f32 to vector<8x128xf32>
    %93 = arith.mulf %3, %92 : vector<8x128xf32>
    %94 = arith.addf %90, %93 : vector<8x128xf32>
    %c5_22 = arith.constant 5 : index
    %95 = memref.load %arg2[%c5_22] : memref<16xf32, #tpu.memory_space<smem>>
    %96 = vector.broadcast %95 : f32 to vector<8x128xf32>
    %97 = arith.addf %94, %96 : vector<8x128xf32>
    %cst_23 = arith.constant 0.000000e+00 : f32
    %98 = vector.broadcast %cst_23 : f32 to vector<8x128xf32>
    %99 = arith.maximumf %97, %98 : vector<8x128xf32>
    %c5_24 = arith.constant 5 : index
    %100 = memref.load %arg3[%c5_24] : memref<16xf32, #tpu.memory_space<smem>>
    %101 = vector.broadcast %100 : f32 to vector<8x128xf32>
    %102 = arith.mulf %99, %101 : vector<8x128xf32>
    %103 = arith.addf %87, %102 : vector<8x128xf32>
    %c6 = arith.constant 6 : index
    %104 = memref.load %arg1[%c6] : memref<32xf32, #tpu.memory_space<smem>>
    %105 = vector.broadcast %104 : f32 to vector<8x128xf32>
    %106 = arith.mulf %1, %105 : vector<8x128xf32>
    %c22 = arith.constant 22 : index
    %107 = memref.load %arg1[%c22] : memref<32xf32, #tpu.memory_space<smem>>
    %108 = vector.broadcast %107 : f32 to vector<8x128xf32>
    %109 = arith.mulf %3, %108 : vector<8x128xf32>
    %110 = arith.addf %106, %109 : vector<8x128xf32>
    %c6_25 = arith.constant 6 : index
    %111 = memref.load %arg2[%c6_25] : memref<16xf32, #tpu.memory_space<smem>>
    %112 = vector.broadcast %111 : f32 to vector<8x128xf32>
    %113 = arith.addf %110, %112 : vector<8x128xf32>
    %cst_26 = arith.constant 0.000000e+00 : f32
    %114 = vector.broadcast %cst_26 : f32 to vector<8x128xf32>
    %115 = arith.maximumf %113, %114 : vector<8x128xf32>
    %c6_27 = arith.constant 6 : index
    %116 = memref.load %arg3[%c6_27] : memref<16xf32, #tpu.memory_space<smem>>
    %117 = vector.broadcast %116 : f32 to vector<8x128xf32>
    %118 = arith.mulf %115, %117 : vector<8x128xf32>
    %119 = arith.addf %103, %118 : vector<8x128xf32>
    %c7 = arith.constant 7 : index
    %120 = memref.load %arg1[%c7] : memref<32xf32, #tpu.memory_space<smem>>
    %121 = vector.broadcast %120 : f32 to vector<8x128xf32>
    %122 = arith.mulf %1, %121 : vector<8x128xf32>
    %c23 = arith.constant 23 : index
    %123 = memref.load %arg1[%c23] : memref<32xf32, #tpu.memory_space<smem>>
    %124 = vector.broadcast %123 : f32 to vector<8x128xf32>
    %125 = arith.mulf %3, %124 : vector<8x128xf32>
    %126 = arith.addf %122, %125 : vector<8x128xf32>
    %c7_28 = arith.constant 7 : index
    %127 = memref.load %arg2[%c7_28] : memref<16xf32, #tpu.memory_space<smem>>
    %128 = vector.broadcast %127 : f32 to vector<8x128xf32>
    %129 = arith.addf %126, %128 : vector<8x128xf32>
    %cst_29 = arith.constant 0.000000e+00 : f32
    %130 = vector.broadcast %cst_29 : f32 to vector<8x128xf32>
    %131 = arith.maximumf %129, %130 : vector<8x128xf32>
    %c7_30 = arith.constant 7 : index
    %132 = memref.load %arg3[%c7_30] : memref<16xf32, #tpu.memory_space<smem>>
    %133 = vector.broadcast %132 : f32 to vector<8x128xf32>
    %134 = arith.mulf %131, %133 : vector<8x128xf32>
    %135 = arith.addf %119, %134 : vector<8x128xf32>
    %c8 = arith.constant 8 : index
    %136 = memref.load %arg1[%c8] : memref<32xf32, #tpu.memory_space<smem>>
    %137 = vector.broadcast %136 : f32 to vector<8x128xf32>
    %138 = arith.mulf %1, %137 : vector<8x128xf32>
    %c24 = arith.constant 24 : index
    %139 = memref.load %arg1[%c24] : memref<32xf32, #tpu.memory_space<smem>>
    %140 = vector.broadcast %139 : f32 to vector<8x128xf32>
    %141 = arith.mulf %3, %140 : vector<8x128xf32>
    %142 = arith.addf %138, %141 : vector<8x128xf32>
    %c8_31 = arith.constant 8 : index
    %143 = memref.load %arg2[%c8_31] : memref<16xf32, #tpu.memory_space<smem>>
    %144 = vector.broadcast %143 : f32 to vector<8x128xf32>
    %145 = arith.addf %142, %144 : vector<8x128xf32>
    %cst_32 = arith.constant 0.000000e+00 : f32
    %146 = vector.broadcast %cst_32 : f32 to vector<8x128xf32>
    %147 = arith.maximumf %145, %146 : vector<8x128xf32>
    %c8_33 = arith.constant 8 : index
    %148 = memref.load %arg3[%c8_33] : memref<16xf32, #tpu.memory_space<smem>>
    %149 = vector.broadcast %148 : f32 to vector<8x128xf32>
    %150 = arith.mulf %147, %149 : vector<8x128xf32>
    %151 = arith.addf %135, %150 : vector<8x128xf32>
    %c9 = arith.constant 9 : index
    %152 = memref.load %arg1[%c9] : memref<32xf32, #tpu.memory_space<smem>>
    %153 = vector.broadcast %152 : f32 to vector<8x128xf32>
    %154 = arith.mulf %1, %153 : vector<8x128xf32>
    %c25 = arith.constant 25 : index
    %155 = memref.load %arg1[%c25] : memref<32xf32, #tpu.memory_space<smem>>
    %156 = vector.broadcast %155 : f32 to vector<8x128xf32>
    %157 = arith.mulf %3, %156 : vector<8x128xf32>
    %158 = arith.addf %154, %157 : vector<8x128xf32>
    %c9_34 = arith.constant 9 : index
    %159 = memref.load %arg2[%c9_34] : memref<16xf32, #tpu.memory_space<smem>>
    %160 = vector.broadcast %159 : f32 to vector<8x128xf32>
    %161 = arith.addf %158, %160 : vector<8x128xf32>
    %cst_35 = arith.constant 0.000000e+00 : f32
    %162 = vector.broadcast %cst_35 : f32 to vector<8x128xf32>
    %163 = arith.maximumf %161, %162 : vector<8x128xf32>
    %c9_36 = arith.constant 9 : index
    %164 = memref.load %arg3[%c9_36] : memref<16xf32, #tpu.memory_space<smem>>
    %165 = vector.broadcast %164 : f32 to vector<8x128xf32>
    %166 = arith.mulf %163, %165 : vector<8x128xf32>
    %167 = arith.addf %151, %166 : vector<8x128xf32>
    %c10 = arith.constant 10 : index
    %168 = memref.load %arg1[%c10] : memref<32xf32, #tpu.memory_space<smem>>
    %169 = vector.broadcast %168 : f32 to vector<8x128xf32>
    %170 = arith.mulf %1, %169 : vector<8x128xf32>
    %c26 = arith.constant 26 : index
    %171 = memref.load %arg1[%c26] : memref<32xf32, #tpu.memory_space<smem>>
    %172 = vector.broadcast %171 : f32 to vector<8x128xf32>
    %173 = arith.mulf %3, %172 : vector<8x128xf32>
    %174 = arith.addf %170, %173 : vector<8x128xf32>
    %c10_37 = arith.constant 10 : index
    %175 = memref.load %arg2[%c10_37] : memref<16xf32, #tpu.memory_space<smem>>
    %176 = vector.broadcast %175 : f32 to vector<8x128xf32>
    %177 = arith.addf %174, %176 : vector<8x128xf32>
    %cst_38 = arith.constant 0.000000e+00 : f32
    %178 = vector.broadcast %cst_38 : f32 to vector<8x128xf32>
    %179 = arith.maximumf %177, %178 : vector<8x128xf32>
    %c10_39 = arith.constant 10 : index
    %180 = memref.load %arg3[%c10_39] : memref<16xf32, #tpu.memory_space<smem>>
    %181 = vector.broadcast %180 : f32 to vector<8x128xf32>
    %182 = arith.mulf %179, %181 : vector<8x128xf32>
    %183 = arith.addf %167, %182 : vector<8x128xf32>
    %c11 = arith.constant 11 : index
    %184 = memref.load %arg1[%c11] : memref<32xf32, #tpu.memory_space<smem>>
    %185 = vector.broadcast %184 : f32 to vector<8x128xf32>
    %186 = arith.mulf %1, %185 : vector<8x128xf32>
    %c27 = arith.constant 27 : index
    %187 = memref.load %arg1[%c27] : memref<32xf32, #tpu.memory_space<smem>>
    %188 = vector.broadcast %187 : f32 to vector<8x128xf32>
    %189 = arith.mulf %3, %188 : vector<8x128xf32>
    %190 = arith.addf %186, %189 : vector<8x128xf32>
    %c11_40 = arith.constant 11 : index
    %191 = memref.load %arg2[%c11_40] : memref<16xf32, #tpu.memory_space<smem>>
    %192 = vector.broadcast %191 : f32 to vector<8x128xf32>
    %193 = arith.addf %190, %192 : vector<8x128xf32>
    %cst_41 = arith.constant 0.000000e+00 : f32
    %194 = vector.broadcast %cst_41 : f32 to vector<8x128xf32>
    %195 = arith.maximumf %193, %194 : vector<8x128xf32>
    %c11_42 = arith.constant 11 : index
    %196 = memref.load %arg3[%c11_42] : memref<16xf32, #tpu.memory_space<smem>>
    %197 = vector.broadcast %196 : f32 to vector<8x128xf32>
    %198 = arith.mulf %195, %197 : vector<8x128xf32>
    %199 = arith.addf %183, %198 : vector<8x128xf32>
    %c12 = arith.constant 12 : index
    %200 = memref.load %arg1[%c12] : memref<32xf32, #tpu.memory_space<smem>>
    %201 = vector.broadcast %200 : f32 to vector<8x128xf32>
    %202 = arith.mulf %1, %201 : vector<8x128xf32>
    %c28 = arith.constant 28 : index
    %203 = memref.load %arg1[%c28] : memref<32xf32, #tpu.memory_space<smem>>
    %204 = vector.broadcast %203 : f32 to vector<8x128xf32>
    %205 = arith.mulf %3, %204 : vector<8x128xf32>
    %206 = arith.addf %202, %205 : vector<8x128xf32>
    %c12_43 = arith.constant 12 : index
    %207 = memref.load %arg2[%c12_43] : memref<16xf32, #tpu.memory_space<smem>>
    %208 = vector.broadcast %207 : f32 to vector<8x128xf32>
    %209 = arith.addf %206, %208 : vector<8x128xf32>
    %cst_44 = arith.constant 0.000000e+00 : f32
    %210 = vector.broadcast %cst_44 : f32 to vector<8x128xf32>
    %211 = arith.maximumf %209, %210 : vector<8x128xf32>
    %c12_45 = arith.constant 12 : index
    %212 = memref.load %arg3[%c12_45] : memref<16xf32, #tpu.memory_space<smem>>
    %213 = vector.broadcast %212 : f32 to vector<8x128xf32>
    %214 = arith.mulf %211, %213 : vector<8x128xf32>
    %215 = arith.addf %199, %214 : vector<8x128xf32>
    %c13 = arith.constant 13 : index
    %216 = memref.load %arg1[%c13] : memref<32xf32, #tpu.memory_space<smem>>
    %217 = vector.broadcast %216 : f32 to vector<8x128xf32>
    %218 = arith.mulf %1, %217 : vector<8x128xf32>
    %c29 = arith.constant 29 : index
    %219 = memref.load %arg1[%c29] : memref<32xf32, #tpu.memory_space<smem>>
    %220 = vector.broadcast %219 : f32 to vector<8x128xf32>
    %221 = arith.mulf %3, %220 : vector<8x128xf32>
    %222 = arith.addf %218, %221 : vector<8x128xf32>
    %c13_46 = arith.constant 13 : index
    %223 = memref.load %arg2[%c13_46] : memref<16xf32, #tpu.memory_space<smem>>
    %224 = vector.broadcast %223 : f32 to vector<8x128xf32>
    %225 = arith.addf %222, %224 : vector<8x128xf32>
    %cst_47 = arith.constant 0.000000e+00 : f32
    %226 = vector.broadcast %cst_47 : f32 to vector<8x128xf32>
    %227 = arith.maximumf %225, %226 : vector<8x128xf32>
    %c13_48 = arith.constant 13 : index
    %228 = memref.load %arg3[%c13_48] : memref<16xf32, #tpu.memory_space<smem>>
    %229 = vector.broadcast %228 : f32 to vector<8x128xf32>
    %230 = arith.mulf %227, %229 : vector<8x128xf32>
    %231 = arith.addf %215, %230 : vector<8x128xf32>
    %c14 = arith.constant 14 : index
    %232 = memref.load %arg1[%c14] : memref<32xf32, #tpu.memory_space<smem>>
    %233 = vector.broadcast %232 : f32 to vector<8x128xf32>
    %234 = arith.mulf %1, %233 : vector<8x128xf32>
    %c30 = arith.constant 30 : index
    %235 = memref.load %arg1[%c30] : memref<32xf32, #tpu.memory_space<smem>>
    %236 = vector.broadcast %235 : f32 to vector<8x128xf32>
    %237 = arith.mulf %3, %236 : vector<8x128xf32>
    %238 = arith.addf %234, %237 : vector<8x128xf32>
    %c14_49 = arith.constant 14 : index
    %239 = memref.load %arg2[%c14_49] : memref<16xf32, #tpu.memory_space<smem>>
    %240 = vector.broadcast %239 : f32 to vector<8x128xf32>
    %241 = arith.addf %238, %240 : vector<8x128xf32>
    %cst_50 = arith.constant 0.000000e+00 : f32
    %242 = vector.broadcast %cst_50 : f32 to vector<8x128xf32>
    %243 = arith.maximumf %241, %242 : vector<8x128xf32>
    %c14_51 = arith.constant 14 : index
    %244 = memref.load %arg3[%c14_51] : memref<16xf32, #tpu.memory_space<smem>>
    %245 = vector.broadcast %244 : f32 to vector<8x128xf32>
    %246 = arith.mulf %243, %245 : vector<8x128xf32>
    %247 = arith.addf %231, %246 : vector<8x128xf32>
    %c15 = arith.constant 15 : index
    %248 = memref.load %arg1[%c15] : memref<32xf32, #tpu.memory_space<smem>>
    %249 = vector.broadcast %248 : f32 to vector<8x128xf32>
    %250 = arith.mulf %1, %249 : vector<8x128xf32>
    %c31 = arith.constant 31 : index
    %251 = memref.load %arg1[%c31] : memref<32xf32, #tpu.memory_space<smem>>
    %252 = vector.broadcast %251 : f32 to vector<8x128xf32>
    %253 = arith.mulf %3, %252 : vector<8x128xf32>
    %254 = arith.addf %250, %253 : vector<8x128xf32>
    %c15_52 = arith.constant 15 : index
    %255 = memref.load %arg2[%c15_52] : memref<16xf32, #tpu.memory_space<smem>>
    %256 = vector.broadcast %255 : f32 to vector<8x128xf32>
    %257 = arith.addf %254, %256 : vector<8x128xf32>
    %cst_53 = arith.constant 0.000000e+00 : f32
    %258 = vector.broadcast %cst_53 : f32 to vector<8x128xf32>
    %259 = arith.maximumf %257, %258 : vector<8x128xf32>
    %c15_54 = arith.constant 15 : index
    %260 = memref.load %arg3[%c15_54] : memref<16xf32, #tpu.memory_space<smem>>
    %261 = vector.broadcast %260 : f32 to vector<8x128xf32>
    %262 = arith.mulf %259, %261 : vector<8x128xf32>
    %263 = arith.addf %247, %262 : vector<8x128xf32>
    %c0_55 = arith.constant 0 : index
    %c0_56 = arith.constant 0 : index
    %264 = vector.load %arg6[%c0_55, %c0_56] : memref<8x128xf32, #tpu.memory_space<vmem>>, vector<8x128xf32>
    tpu.vector_store %arg6[%c0_55, %c0_56], %263 {strides = array<i32>} : memref<8x128xf32, #tpu.memory_space<vmem>>, vector<8x128xf32>,
    return
  }
  func.func @transform_0(%arg0: i32) -> i32 {
    %c0_i32 = arith.constant 0 : i32
    %c0_i32_0 = arith.constant 0 : i32
    return %c0_i32 : i32
  }
  func.func @transform_1(%arg0: i32) -> i32 {
    %c0_i32 = arith.constant 0 : i32
    %c0_i32_0 = arith.constant 0 : i32
    return %c0_i32 : i32
  }
  func.func @transform_2(%arg0: i32) -> i32 {
    %c0_i32 = arith.constant 0 : i32
    %c0_i32_0 = arith.constant 0 : i32
    return %c0_i32 : i32
  }
  func.func @transform_3(%arg0: i32) -> i32 {
    %c0_i32 = arith.constant 0 : i32
    %c0_i32_0 = arith.constant 0 : i32
    return %c0_i32 : i32
  }
  func.func @transform_4(%arg0: i32) -> (i32, i32, i32) {
    %c0_i32 = arith.constant 0 : i32
    %c0_i32_0 = arith.constant 0 : i32
    %c0_i32_1 = arith.constant 0 : i32
    return %c0_i32, %arg0, %c0_i32_0 : i32, i32, i32
  }
  func.func @transform_5(%arg0: i32) -> (i32, i32) {
    %c0_i32 = arith.constant 0 : i32
    %c0_i32_0 = arith.constant 0 : i32
    return %arg0, %c0_i32 : i32, i32
  }
}

</mosaic_0001>

<bundles_post_ra>
// kernel: tpu_custom_call.1
= control target key start
LH: loop header
LB: loop body
LE: loop exit
PB: predicated region body
PF: predicated region fallthrough
CT: control target
= control target key end

     0   :  { %11 = vsyncpa [#allocation6], 0  ;;  %s663_s0 = inlined_call_operand.vmem [shape: f32[32], index: 0, kind: input, shape index: {}]   ;;  %s664_s1 = inlined_call_operand.vmem [shape: f32[16], index: 1, kind: input, shape index: {}]   ;;  %s665_s2 = inlined_call_operand.vmem [shape: f32[16], index: 2, kind: input, shape index: {}]   ;;  %s666_s3 = inlined_call_operand.<no memory space> [shape: f32[1], index: 3, kind: input, shape index: {}]   ;;  %s667_s4 = inlined_call_operand.hbm [shape: f32[2,8,128], index: 4, kind: input, shape index: {}]   ;;  %s668_s5 = inlined_call_operand.hbm [shape: f32[8,128], index: 5, kind: output, shape index: {}]  }
   0x1   :  { %12 = vsyncpa [#allocation8], 0 }
   0x2   :  { %13 = vsyncpa [#allocation4], 0  ;;  %s31_s20 = sshll.u32 %s664_s1, 4  ;;  %s32_s20 = int_to_ptr.vmem [resolvable:$true] %s31_s20 }
   0x3   :  { %14 = vsyncpa [#allocation5], 0  ;;  %s21_s23 = sshll.u32 %s663_s0, 4  ;;  %s404_s24 = scalar_lea.vmem %s32_s20, 16  ;;  %s22_s23 = int_to_ptr.vmem [resolvable:$true] %s21_s23 }
   0x4   :  { %p405_p0 = scmp.ne.s32.totalorder %s32_s20, %s404_s24  ;;  %p409_p1 = scmp.lt.s32.totalorder %s32_s20, %s32_s20 }
   0x5   :  { %p410_p2 = scmp.lt.s32.totalorder %s404_s24, %s404_s24 }
   0x7   :  { %p411_p3 = por %p410_p2, %p409_p1 }
   0x9   :  { %p412_p4 = pnand %p411_p3, %p405_p0 }
   0xb   :  { %415 = shalt.err (!%p412_p4)
}
   0xc   :  { %s488_s25 = smov [#allocation7]   ;;  %s416_s26 = scalar_lea.vmem %s22_s23, 16 }
   0xd   :  { %34 = dma.vmem_to_smem %s32_s20, 16, %s488_s25, [#allocation8]  }
   0xe   :  { %p417_p5 = scmp.ne.s32.totalorder %s22_s23, %s416_s26  ;;  %p421_p6 = scmp.lt.s32.totalorder %s22_s23, %s22_s23 }
   0xf   :  { %p422_p7 = scmp.lt.s32.totalorder %s416_s26, %s416_s26 }
  0x11   :  { %p423_p8 = por %p422_p7, %p421_p6 }
  0x13   :  { %p424_p9 = pnand %p423_p8, %p417_p5 }
  0x15   :  { %427 = shalt.err (!%p424_p9)
}
  0x16   :  { %s489_s1 = smov [#allocation3]   ;;  %s41_s28 = sshll.u32 %s665_s2, 4  ;;  %s42_s28 = int_to_ptr.vmem [resolvable:$true] %s41_s28 }
  0x17   :  { %24 = dma.vmem_to_smem %s22_s23, 16, %s489_s1, [#allocation6]  }
  0x18   :  { %s428_s29 = scalar_lea.vmem %s42_s28, 16  ;;  %p433_p11 = scmp.lt.s32.totalorder %s42_s28, %s42_s28 }
  0x19   :  { %p429_p10 = scmp.ne.s32.totalorder %s42_s28, %s428_s29  ;;  %p434_p12 = scmp.lt.s32.totalorder %s428_s29, %s428_s29 }
  0x1b   :  { %p435_p13 = por %p434_p12, %p433_p11 }
  0x1d   :  { %p436_p0 = pnand %p435_p13, %p429_p10 }
  0x1f   :  { %439 = shalt.err (!%p436_p0)
}
  0x20   :  { %s490_s30 = smov [#allocation9]   ;;  %s491_s6 = smov [#allocation10]  }
  0x21   :  { %44 = dma.vmem_to_smem %s42_s28, 16, %s490_s30, [#allocation8]  }
  0x22   :  { %s52_s7 = sshll.u32 %s491_s6, 4  ;;  %s53_s7 = int_to_ptr.vmem [resolvable:$true] %s52_s7 }
  0x23   :  { %s448_s8 = scalar_lea.vmem %s53_s7, 256  ;;  %p453_p2 = scmp.lt.s32.totalorder %s53_s7, %s53_s7 }
  0x24   :  { %p449_p1 = scmp.ne.s32.totalorder %s53_s7, %s448_s8  ;;  %p454_p3 = scmp.lt.s32.totalorder %s448_s8, %s448_s8 }
  0x26   :  { %p455_p4 = por %p454_p3, %p453_p2 }
  0x28   :  { %p456_p5 = pnand %p455_p4, %p449_p1 }
  0x2a   :  { %459 = shalt.err (!%p456_p5)
}
  0x2b   :  { %s492_s2 = smov 128   ;;  %s493_s9 = smov 8  }
  0x2c   :  { %58 = dma.hbm_to_vmem [thread:$0]  %s667_s4, 256, %s53_s7, [#allocation4], %s492_s2, %s492_s2, %s493_s9  }
  0x2d   :  { %480 = dma.done.wait [#allocation6], 16  }
  0x2e   :  { %481 = vsyncadd [#allocation6], 4294967280 }
  0x2f   :  { %482 = dma.done.wait [#allocation8], 32  }
  0x30   :  { %483 = vsyncadd [#allocation8], 4294967264 }
  0x31   :  { %484 = dma.done.wait [#allocation4], 256  }
  0x32   :  { %485 = vsyncadd [#allocation4], 4294967040 }
  0x33   :  { %71 = sfence }
  0x34   :  { %s78_s12 = sld [smem:[#allocation3]]  ;;  %v539_v0 = vld [vmem:[#allocation10] sm:$0xff]  ;;  %v541_v1 = vld [vmem:[#allocation10 + $0x8] sm:$0xff]  ;;  %v76_v18 = vstv %s666_s3 }
  0x35   :  { %s336_s13 = sld [smem:[#allocation3 + $0x10]] }
  0x36   :  { %s85_s14 = sld [smem:[#allocation7]] }
  0x37   :  { %s537_s15 = sld [smem:[#allocation9]] }
  0x38   :  { %s337_s16 = sld [smem:[#allocation3 + $0x1]] }
  0x39   :  { %s338_s17 = sld [smem:[#allocation3 + $0x11]] }
  0x3a   :  { %v79_v2 = vstv %s78_s12  ;;  %s339_s4 = sld [smem:[#allocation7 + $0x1]] }
  0x3b   :  { %v80_v3 = vmul.f32 %v79_v2, %v539_v0  ;;  %v82_v4 = vstv %s336_s13  ;;  %s544_s18 = sld [smem:[#allocation9 + $0x1]] }
  0x3c   :  { %v83_v5 = vmul.f32 %v82_v4, %v541_v1  ;;  %s341_s19 = sld [smem:[#allocation3 + $0x2]]  ;;  %v86_v6 = vstv %s85_s14 }
  0x3d   :  { %s342_s20 = sld [smem:[#allocation3 + $0x12]]  ;;  %v90_v13 = vstv %s537_s15 }
  0x3e   :  { %v84_v7 = vadd.f32 %v83_v5, %v80_v3  ;;  %v94_v8 = vstv %s337_s16  ;;  %s547_s21 = sld [smem:[#allocation7 + $0x2]] }
  0x3f   :  { %v95_v9 = vmul.f32 %v94_v8, %v539_v0  ;;  %v97_v10 = vstv %s338_s17  ;;  %s550_s22 = sld [smem:[#allocation9 + $0x2]] }
  0x40   :  { %v87_v11 = vadd.f32 %v86_v6, %v84_v7  ;;  %v98_v12 = vmul.f32 %v97_v10, %v541_v1  ;;  %s345_s23 = sld [smem:[#allocation3 + $0x3]]  ;;  %v101_v14 = vstv %s339_s4 }
  0x41   :  { %s346_s24 = sld [smem:[#allocation3 + $0x13]]  ;;  %v105_v24 = vstv %s544_s18 }
  0x42   :  { %v88_v15 = vmax.f32 %v87_v11, 0.0  ;;  %v99_v16 = vadd.f32 %v98_v12, %v95_v9  ;;  %v109_v17 = vstv %s341_s19  ;;  %s554_s25 = sld [smem:[#allocation7 + $0x3]] }
  0x43   :  { %v110_v19 = vmul.f32 %v109_v17, %v539_v0  ;;  %v112_v20 = vstv %s342_s20  ;;  %s560_s0 = sld [smem:[#allocation9 + $0x3]] }
  0x44   :  { %v91_v21 = vmul.f32 %v90_v13, %v88_v15  ;;  %v102_v22 = vadd.f32 %v101_v14, %v99_v16  ;;  %v113_v23 = vmul.f32 %v112_v20, %v541_v1  ;;  %s349_s27 = sld [smem:[#allocation3 + $0x4]]  ;;  %v116_v25 = vstv %s547_s21 }
  0x45   :  { %s350_s28 = sld [smem:[#allocation3 + $0x14]]  ;;  %v120_v35 = vstv %s550_s22 }
  0x46   :  { %v92_v26 = vadd.f32 %v91_v21, %v76_v18  ;;  %v103_v27 = vmax.f32 %v102_v22, 0.0  ;;  %v114_v28 = vadd.f32 %v113_v23, %v110_v19  ;;  %v124_v29 = vstv %s345_s23  ;;  %s565_s3 = sld [smem:[#allocation7 + $0x4]] }
  0x47   :  { %v125_v30 = vmul.f32 %v124_v29, %v539_v0  ;;  %v127_v31 = vstv %s346_s24  ;;  %s568_s29 = sld [smem:[#allocation9 + $0x4]] }
  0x48   :  { %v106_v32 = vmul.f32 %v105_v24, %v103_v27  ;;  %v117_v33 = vadd.f32 %v116_v25, %v114_v28  ;;  %v128_v34 = vmul.f32 %v127_v31, %v541_v1  ;;  %s353_s30 = sld [smem:[#allocation3 + $0x5]]  ;;  %v131_v36 = vstv %s554_s25 }
  0x49   :  { %s354_s6 = sld [smem:[#allocation3 + $0x15]]  ;;  %v135_v46 = vstv %s560_s0 }
  0x4a   :  { %v107_v37 = vadd.f32 %v106_v32, %v92_v26  ;;  %v118_v38 = vmax.f32 %v117_v33, 0.0  ;;  %v129_v39 = vadd.f32 %v128_v34, %v125_v30  ;;  %v139_v40 = vstv %s349_s27  ;;  %s573_s7 = sld [smem:[#allocation7 + $0x5]] }
  0x4b   :  { %v140_v41 = vmul.f32 %v139_v40, %v539_v0  ;;  %v142_v42 = vstv %s350_s28  ;;  %s576_s8 = sld [smem:[#allocation9 + $0x5]] }
  0x4c   :  { %v121_v43 = vmul.f32 %v120_v35, %v118_v38  ;;  %v132_v44 = vadd.f32 %v131_v36, %v129_v39  ;;  %v143_v45 = vmul.f32 %v142_v42, %v541_v1  ;;  %s357_s2 = sld [smem:[#allocation3 + $0x6]]  ;;  %v146_v47 = vstv %s565_s3 }
  0x4d   :  { %s358_s9 = sld [smem:[#allocation3 + $0x16]]  ;;  %v150_v57 = vstv %s568_s29 }
  0x4e   :  { %v122_v48 = vadd.f32 %v121_v43, %v107_v37  ;;  %v133_v49 = vmax.f32 %v132_v44, 0.0  ;;  %v144_v50 = vadd.f32 %v143_v45, %v140_v41  ;;  %v154_v51 = vstv %s353_s30  ;;  %s581_s10 = sld [smem:[#allocation7 + $0x6]] }
  0x4f   :  { %v155_v52 = vmul.f32 %v154_v51, %v539_v0  ;;  %v157_v53 = vstv %s354_s6  ;;  %s584_s11 = sld [smem:[#allocation9 + $0x6]] }
  0x50   :  { %v136_v54 = vmul.f32 %v135_v46, %v133_v49  ;;  %v147_v55 = vadd.f32 %v146_v47, %v144_v50  ;;  %v158_v56 = vmul.f32 %v157_v53, %v541_v1  ;;  %s361_s12 = sld [smem:[#allocation3 + $0x7]]  ;;  %v161_v58 = vstv %s573_s7 }
  0x51   :  { %s362_s13 = sld [smem:[#allocation3 + $0x17]]  ;;  %v165_v6 = vstv %s576_s8 }
  0x52   :  { %v137_v59 = vadd.f32 %v136_v54, %v122_v48  ;;  %v148_v60 = vmax.f32 %v147_v55, 0.0  ;;  %v159_v61 = vadd.f32 %v158_v56, %v155_v52  ;;  %v169_v62 = vstv %s357_s2  ;;  %s589_s14 = sld [smem:[#allocation7 + $0x7]] }
  0x53   :  { %v170_v63 = vmul.f32 %v169_v62, %v539_v0  ;;  %v172_v2 = vstv %s358_s9  ;;  %s592_s15 = sld [smem:[#allocation9 + $0x7]] }
  0x54   :  { %v151_v3 = vmul.f32 %v150_v57, %v148_v60  ;;  %v162_v4 = vadd.f32 %v161_v58, %v159_v61  ;;  %v173_v5 = vmul.f32 %v172_v2, %v541_v1  ;;  %s365_s16 = sld [smem:[#allocation3 + $0x8]]  ;;  %v176_v7 = vstv %s581_s10 }
  0x55   :  { %s366_s17 = sld [smem:[#allocation3 + $0x18]]  ;;  %v180_v17 = vstv %s584_s11 }
  0x56   :  { %v152_v8 = vadd.f32 %v151_v3, %v137_v59  ;;  %v163_v9 = vmax.f32 %v162_v4, 0.0  ;;  %v174_v10 = vadd.f32 %v173_v5, %v170_v63  ;;  %v184_v11 = vstv %s361_s12  ;;  %s597_s4 = sld [smem:[#allocation7 + $0x8]] }
  0x57   :  { %v185_v12 = vmul.f32 %v184_v11, %v539_v0  ;;  %v187_v13 = vstv %s362_s13  ;;  %s600_s18 = sld [smem:[#allocation9 + $0x8]] }
  0x58   :  { %v166_v14 = vmul.f32 %v165_v6, %v163_v9  ;;  %v177_v15 = vadd.f32 %v176_v7, %v174_v10  ;;  %v188_v16 = vmul.f32 %v187_v13, %v541_v1  ;;  %s369_s19 = sld [smem:[#allocation3 + $0x9]]  ;;  %v191_v18 = vstv %s589_s14 }
  0x59   :  { %s370_s20 = sld [smem:[#allocation3 + $0x19]]  ;;  %v195_v28 = vstv %s592_s15 }
  0x5a   :  { %v167_v19 = vadd.f32 %v166_v14, %v152_v8  ;;  %v178_v20 = vmax.f32 %v177_v15, 0.0  ;;  %v189_v21 = vadd.f32 %v188_v16, %v185_v12  ;;  %v199_v22 = vstv %s365_s16  ;;  %s605_s21 = sld [smem:[#allocation7 + $0x9]] }
  0x5b   :  { %v200_v23 = vmul.f32 %v199_v22, %v539_v0  ;;  %v202_v24 = vstv %s366_s17  ;;  %s608_s22 = sld [smem:[#allocation9 + $0x9]] }
  0x5c   :  { %v181_v25 = vmul.f32 %v180_v17, %v178_v20  ;;  %v192_v26 = vadd.f32 %v191_v18, %v189_v21  ;;  %v203_v27 = vmul.f32 %v202_v24, %v541_v1  ;;  %s373_s23 = sld [smem:[#allocation3 + $0xa]]  ;;  %v206_v29 = vstv %s597_s4  ;;  %s494_s4 = smov [#allocation11]  }
  0x5d   :  { %s374_s24 = sld [smem:[#allocation3 + $0x1a]]  ;;  %v210_v39 = vstv %s600_s18  ;;  %s325_s18 = sshll.u32 %s494_s4, 4  ;;  %s326_s18 = int_to_ptr.vmem [resolvable:$true] %s325_s18 }
  0x5e   :  { %v182_v30 = vadd.f32 %v181_v25, %v167_v19  ;;  %v193_v31 = vmax.f32 %v192_v26, 0.0  ;;  %v204_v32 = vadd.f32 %v203_v27, %v200_v23  ;;  %v214_v33 = vstv %s369_s19  ;;  %s613_s25 = sld [smem:[#allocation7 + $0xa]]  ;;  %s460_s19 = scalar_lea.vmem %s326_s18, 128 }
  0x5f   :  { %v215_v34 = vmul.f32 %v214_v33, %v539_v0  ;;  %v217_v35 = vstv %s370_s20  ;;  %s616_s26 = sld [smem:[#allocation9 + $0xa]]  ;;  %p461_p6 = scmp.ne.s32.totalorder %s326_s18, %s460_s19 }
  0x60   :  { %v196_v36 = vmul.f32 %v195_v28, %v193_v31  ;;  %v207_v37 = vadd.f32 %v206_v29, %v204_v32  ;;  %v218_v38 = vmul.f32 %v217_v35, %v541_v1  ;;  %s377_s1 = sld [smem:[#allocation3 + $0xb]]  ;;  %v221_v40 = vstv %s605_s21  ;;  %p465_p7 = scmp.lt.s32.totalorder %s326_s18, %s326_s18 }
  0x61   :  { %s378_s0 = sld [smem:[#allocation3 + $0x1b]]  ;;  %v225_v50 = vstv %s608_s22  ;;  %p466_p8 = scmp.lt.s32.totalorder %s460_s19, %s460_s19 }
  0x62   :  { %v197_v41 = vadd.f32 %v196_v36, %v182_v30  ;;  %v208_v42 = vmax.f32 %v207_v37, 0.0  ;;  %v219_v43 = vadd.f32 %v218_v38, %v215_v34  ;;  %v229_v44 = vstv %s373_s23  ;;  %s621_s27 = sld [smem:[#allocation7 + $0xb]] }
  0x63   :  { %v230_v45 = vmul.f32 %v229_v44, %v539_v0  ;;  %v232_v46 = vstv %s374_s24  ;;  %s624_s28 = sld [smem:[#allocation9 + $0xb]]  ;;  %p467_p9 = por %p466_p8, %p465_p7 }
  0x64   :  { %v211_v47 = vmul.f32 %v210_v39, %v208_v42  ;;  %v222_v48 = vadd.f32 %v221_v40, %v219_v43  ;;  %v233_v49 = vmul.f32 %v232_v46, %v541_v1  ;;  %s381_s3 = sld [smem:[#allocation3 + $0xc]]  ;;  %v236_v51 = vstv %s613_s25 }
  0x65   :  { %s382_s29 = sld [smem:[#allocation3 + $0x1c]]  ;;  %v240_v61 = vstv %s616_s26  ;;  %p468_p10 = pnand %p467_p9, %p461_p6 }
  0x66   :  { %v212_v52 = vadd.f32 %v211_v47, %v197_v41  ;;  %v223_v53 = vmax.f32 %v222_v48, 0.0  ;;  %v234_v54 = vadd.f32 %v233_v49, %v230_v45  ;;  %v244_v55 = vstv %s377_s1  ;;  %s629_s30 = sld [smem:[#allocation7 + $0xc]] }
  0x67   :  { %v245_v56 = vmul.f32 %v244_v55, %v539_v0  ;;  %v247_v57 = vstv %s378_s0  ;;  %s632_s6 = sld [smem:[#allocation9 + $0xc]] }
  0x68   :  { %v226_v58 = vmul.f32 %v225_v50, %v223_v53  ;;  %v237_v59 = vadd.f32 %v236_v51, %v234_v54  ;;  %v248_v60 = vmul.f32 %v247_v57, %v541_v1  ;;  %s385_s7 = sld [smem:[#allocation3 + $0xd]]  ;;  %v251_v62 = vstv %s621_s27 }
  0x69   :  { %s386_s8 = sld [smem:[#allocation3 + $0x1d]]  ;;  %v255_v10 = vstv %s624_s28 }
  0x6a   :  { %v227_v63 = vadd.f32 %v226_v58, %v212_v52  ;;  %v238_v2 = vmax.f32 %v237_v59, 0.0  ;;  %v249_v3 = vadd.f32 %v248_v60, %v245_v56  ;;  %v259_v4 = vstv %s381_s3  ;;  %s637_s2 = sld [smem:[#allocation7 + $0xd]] }
  0x6b   :  { %v260_v5 = vmul.f32 %v259_v4, %v539_v0  ;;  %v262_v6 = vstv %s382_s29  ;;  %s640_s9 = sld [smem:[#allocation9 + $0xd]] }
  0x6c   :  { %v241_v7 = vmul.f32 %v240_v61, %v238_v2  ;;  %v252_v8 = vadd.f32 %v251_v62, %v249_v3  ;;  %v263_v9 = vmul.f32 %v262_v6, %v541_v1  ;;  %s389_s10 = sld [smem:[#allocation3 + $0xe]]  ;;  %v266_v11 = vstv %s629_s30 }
  0x6d   :  { %s390_s11 = sld [smem:[#allocation3 + $0x1e]]  ;;  %v270_v21 = vstv %s632_s6 }
  0x6e   :  { %v242_v12 = vadd.f32 %v241_v7, %v227_v63  ;;  %v253_v13 = vmax.f32 %v252_v8, 0.0  ;;  %v264_v14 = vadd.f32 %v263_v9, %v260_v5  ;;  %v274_v15 = vstv %s385_s7  ;;  %s645_s12 = sld [smem:[#allocation7 + $0xe]] }
  0x6f   :  { %v275_v16 = vmul.f32 %v274_v15, %v539_v0  ;;  %v277_v17 = vstv %s386_s8  ;;  %s648_s13 = sld [smem:[#allocation9 + $0xe]] }
  0x70   :  { %v256_v18 = vmul.f32 %v255_v10, %v253_v13  ;;  %v267_v19 = vadd.f32 %v266_v11, %v264_v14  ;;  %v278_v20 = vmul.f32 %v277_v17, %v541_v1  ;;  %s393_s14 = sld [smem:[#allocation3 + $0xf]]  ;;  %v281_v22 = vstv %s637_s2 }
  0x71   :  { %s394_s15 = sld [smem:[#allocation3 + $0x1f]]  ;;  %v285_v32 = vstv %s640_s9 }
  0x72   :  { %v257_v23 = vadd.f32 %v256_v18, %v242_v12  ;;  %v268_v24 = vmax.f32 %v267_v19, 0.0  ;;  %v279_v25 = vadd.f32 %v278_v20, %v275_v16  ;;  %v289_v26 = vstv %s389_s10  ;;  %s395_s16 = sld [smem:[#allocation7 + $0xf]] }
  0x73   :  { %v290_v27 = vmul.f32 %v289_v26, %v539_v0  ;;  %v292_v28 = vstv %s390_s11  ;;  %s396_s17 = sld [smem:[#allocation9 + $0xf]] }
  0x74   :  { %v271_v29 = vmul.f32 %v270_v21, %v268_v24  ;;  %v282_v30 = vadd.f32 %v281_v22, %v279_v25  ;;  %v293_v31 = vmul.f32 %v292_v28, %v541_v1  ;;  %v296_v33 = vstv %s645_s12 }
  0x75   :  { %v300_v43 = vstv %s648_s13 }
  0x76   :  { %v272_v34 = vadd.f32 %v271_v29, %v257_v23  ;;  %v283_v35 = vmax.f32 %v282_v30, 0.0  ;;  %v294_v36 = vadd.f32 %v293_v31, %v290_v27  ;;  %v304_v37 = vstv %s393_s14 }
  0x77   :  { %v305_v38 = vmul.f32 %v304_v37, %v539_v0  ;;  %v307_v39 = vstv %s394_s15 }
  0x78   :  { %v286_v40 = vmul.f32 %v285_v32, %v283_v35  ;;  %v297_v41 = vadd.f32 %v296_v33, %v294_v36  ;;  %v308_v42 = vmul.f32 %v307_v39, %v541_v1  ;;  %v311_v44 = vstv %s395_s16 }
  0x79   :  { %v315_v50 = vstv %s396_s17 }
  0x7a   :  { %v287_v45 = vadd.f32 %v286_v40, %v272_v34  ;;  %v298_v46 = vmax.f32 %v297_v41, 0.0  ;;  %v309_v47 = vadd.f32 %v308_v42, %v305_v38 }
  0x7c   :  { %v301_v48 = vmul.f32 %v300_v43, %v298_v46  ;;  %v312_v49 = vadd.f32 %v311_v44, %v309_v47 }
  0x7e   :  { %v302_v51 = vadd.f32 %v301_v48, %v287_v45  ;;  %v313_v52 = vmax.f32 %v312_v49, 0.0 }
  0x80   :  { %v316_v53 = vmul.f32 %v315_v50, %v313_v52 }
  0x82   :  { %v317_v54 = vadd.f32 %v316_v53, %v302_v51 }
  0x84   :  { %318 = vst [vmem:[#allocation11] sm:$0xff] %v317_v54 }
  0x85   :  { %471 = shalt.err (!%p468_p10)
}
  0x86   :  { %328 = dma.vmem_to_hbm [thread:$0]  %s326_s18, 128, %s668_s5, [#allocation5]  }
  0x87   :  { %486 = dma.done.wait [#allocation5], 128  }
  0x88   :  { %487 = vsyncadd [#allocation5], 4294967168 }
  0x89   :  { %332 = vsyncpa [#allocation4], 1 }
  0x8a   :  { %333 = vsyncpa [#allocation5], 1 }
  0x8b   :  { %334 = vsyncpa [#allocation6], 1 }
  0x8c   :  { %335 = vsyncpa [#allocation8], 1 }

</bundles_post_ra>
